<compile_context>
chip_gen: v6e
topology: v6e:2x2x1
jax: 0.10.0
libtpu: 0.0.40
codegen_flags: <defaults>
</compile_context>

<pallas_src>
import numpy as np
import jax
import jax.numpy as jnp
from jax.experimental import pallas as pl
from jax.experimental.pallas import tpu as pltpu

# ---- static configuration (from the module __init__) ----
SAMPLE_RATE = 200
N_FFT = 400
WIN_LEN = 60
HOP = 30
N_FREQS = N_FFT // 2 + 1          # 201 (onesided)
N_FILTER = 32
N_LFCC = 8
F_MIN = 0.0
F_MAX = 100.0

LEFT = (N_FFT - WIN_LEN) // 2     # 170: window offset inside the n_fft frame
KWIN = 64                         # 60 windowed samples padded to 64 (contraction dim)
KPAD = 256                        # 201 freqs padded to 256 (vreg-aligned split point)
NOUT = 128                        # lane-dense output width (8 real lfcc + zero pad)
M_BLOCK_MAX = 256                 # M tile (full 256-wide MXU on v6e/v7x; fine on v5e)


def _build_constants():
    """Deterministic LFCC constants (windowed DFT basis, filterbank, scaled DCT)."""
    j = np.arange(WIN_LEN)
    k = np.arange(N_FREQS)

    # periodic hann(60), folded into the DFT basis. The window sits at offset
    # LEFT inside the n_fft=400 frame, so the DFT sample index is (j + LEFT).
    w = 0.5 - 0.5 * np.cos(2.0 * np.pi * j / WIN_LEN)
    ang = 2.0 * np.pi * np.outer(j + LEFT, k) / N_FFT            # (60, 201)
    coswsin = np.zeros((KWIN, 2 * KPAD), np.float32)             # [cos | sin]
    coswsin[:WIN_LEN, :N_FREQS] = w[:, None] * np.cos(ang)
    coswsin[:WIN_LEN, KPAD:KPAD + N_FREQS] = w[:, None] * np.sin(ang)

    # torchaudio.functional.linear_fbanks (201 freqs -> 32 triangular filters)
    all_freqs = np.linspace(0.0, SAMPLE_RATE // 2, N_FREQS)      # (201,)
    f_pts = np.linspace(F_MIN, F_MAX, N_FILTER + 2)              # (34,)
    f_diff = f_pts[1:] - f_pts[:-1]
    slopes = f_pts[None, :] - all_freqs[:, None]                 # (201, 34)
    down = (-slopes[:, :-2]) / f_diff[:-1]
    up = slopes[:, 2:] / f_diff[1:]
    fb_core = np.maximum(0.0, np.minimum(down, up))              # (201, 32)
    fb = np.zeros((KPAD, N_FILTER), np.float32)
    fb[:N_FREQS] = fb_core

    # torchaudio.functional.create_dct (dct_type=2, norm='ortho'),
    # zero-padded to 128 output columns for a lane-dense store, with the
    # amplitude_to_DB multiplier 10/ln(10) folded in (kernel uses plain log).
    nn_ = np.arange(N_FILTER)
    kk = np.arange(N_LFCC)[:, None]
    dct = np.cos(np.pi / N_FILTER * (nn_ + 0.5) * kk)            # (8, 32)
    dct[0] *= 1.0 / np.sqrt(2.0)
    dct *= np.sqrt(2.0 / N_FILTER)
    db_scale = 10.0 / np.log(10.0)                               # 10*log10(x) = db_scale*ln(x)
    dctm = np.zeros((N_FILTER, NOUT), np.float32)
    dctm[:, :N_LFCC] = db_scale * dct.T                          # (32, 128)

    return jnp.asarray(coswsin), jnp.asarray(fb), jnp.asarray(dctm)


def lfcc_kernel(frames_ref, coswsin_ref, fb_ref, dct_ref, out_ref):
    # frames: (Mb, 64)  coswsin: (64, 512)  fb: (256, 32)  dct: (32, 128)
    # out:    (Mb, 128)   (columns 8..127 are junk, sliced off in the wrapper)
    reim = jnp.dot(frames_ref[...], coswsin_ref[...],
                   preferred_element_type=jnp.float32)            # one MXU DFT
    re = reim[:, :KPAD]                                           # static lane slice
    im = reim[:, KPAD:]
    power = re * re + im * im                                     # |X|^2 (VPU)
    filt = jnp.dot(power, fb_ref[...],
                   preferred_element_type=jnp.float32)            # filterbank (MXU)
    logf = jnp.log(jnp.maximum(filt, 1e-10))                      # dB scale folded in dct
    lfcc = jnp.dot(logf, dct_ref[...],
                   preferred_element_type=jnp.float32)            # DCT-II ortho (MXU)
    out_ref[...] = jnp.log(jnp.abs(lfcc) + 1e-10)                 # module's log|.|


def lfcc_feature(batch):
    """batch: (B, C, T) float32 -> (B, C, N_LFCC, n_frames) float32."""
    B, C, T = batch.shape
    bc = B * C
    x = batch.reshape(bc, T).astype(jnp.float32)

    # torch.stft center=True: reflect-pad by n_fft//2 on both sides.
    # Requires T > 200 (same restriction as torch.stft).
    pad = N_FFT // 2
    xp = jnp.pad(x, ((0, 0), (pad, pad)), mode="reflect")
    n_frames = 1 + (T + 2 * pad - N_FFT) // HOP

    # Only the 60 windowed samples of each frame contribute (window is zero
    # elsewhere), so extract 60 samples per frame at offset i*HOP + LEFT.
    # TODO(synk): for very long T, move framing into the kernel with pl.ds on a
    # pl.ANY signal ref to avoid this XLA gather entirely.
    idx = np.arange(n_frames)[:, None] * HOP + LEFT + np.arange(WIN_LEN)[None, :]
    frames = xp[:, idx]                                           # (bc, F, 60)

    # Flatten (bc, n_frames) into a dense matmul M dimension.
    m = bc * n_frames
    m_block = M_BLOCK_MAX
    if m < m_block:
        m_block = max(8, ((m + 7) // 8) * 8)
    m_pad = (-(-m // m_block)) * m_block

    frames = frames.reshape(m, WIN_LEN)
    frames = jnp.pad(frames, ((0, m_pad - m), (0, KWIN - WIN_LEN)))  # (m_pad, 64)

    coswsin, fb, dctm = _build_constants()

    out = pl.pallas_call(
        lfcc_kernel,
        out_shape=jax.ShapeDtypeStruct((m_pad, NOUT), jnp.float32),
        grid_spec=pltpu.PrefetchScalarGridSpec(
            num_scalar_prefetch=0,
            grid=(m_pad // m_block,),
            in_specs=[
                pl.BlockSpec((m_block, KWIN), lambda i: (i, 0)),
                pl.BlockSpec((KWIN, 2 * KPAD), lambda i: (0, 0)),
                pl.BlockSpec((KPAD, N_FILTER), lambda i: (0, 0)),
                pl.BlockSpec((N_FILTER, NOUT), lambda i: (0, 0)),
            ],
            out_specs=pl.BlockSpec((m_block, NOUT), lambda i: (i, 0)),
        ),
        compiler_params=pltpu.CompilerParams(
            dimension_semantics=("parallel",)),
    )(frames, coswsin, fb, dctm)

    # Drop row/lane padding, reshape to PyTorch layout (B, C, n_lfcc, time).
    out = out[:m, :N_LFCC].reshape(B, C, n_frames, N_LFCC)
    return out.transpose(0, 1, 3, 2)


if __name__ == "__main__":
    key = jax.random.PRNGKey(0)
    B, C, T = 2, 4, 256                       # small multi-channel signals
    batch = jax.random.normal(key, (B, C, T), dtype=jnp.float32)

    out = jax.jit(lfcc_feature)(batch)
    out = jax.block_until_ready(out)

    expected_frames = 1 + T // HOP            # center=True framing
    assert out.shape == (B, C, N_LFCC, expected_frames), out.shape
    assert out.dtype == jnp.float32
    assert bool(jnp.all(jnp.isfinite(out)))
    print("KERNEL_OK")
</pallas_src>

<mosaic_0001>
module attributes {stable_mosaic.version = 11 : i64} {
  func.func @lfcc_kernel(%arg0: i32, %arg1: memref<72x64xf32, #tpu.memory_space<vmem>>, %arg2: memref<64x512xf32, #tpu.memory_space<vmem>>, %arg3: memref<256x32xf32, #tpu.memory_space<vmem>>, %arg4: memref<32x128xf32, #tpu.memory_space<vmem>>, %arg5: memref<72x128xf32, #tpu.memory_space<vmem>>) attributes {dimension_semantics = [#tpu.dimension_semantics<parallel>], iteration_bounds = array<i64: 1>, scalar_prefetch = 0 : i64, scratch_operands = 0 : i64, tpu.core_type = #tpu.core_type<tc>, window_params = [{transform_indices = @transform_0, window_bounds = array<i64: 72, 64>}, {pipeline_mode = #tpu.pipeline_mode<synchronous>, transform_indices = @transform_1, window_bounds = array<i64: 64, 512>}, {pipeline_mode = #tpu.pipeline_mode<synchronous>, transform_indices = @transform_2, window_bounds = array<i64: 256, 32>}, {pipeline_mode = #tpu.pipeline_mode<synchronous>, transform_indices = @transform_3, window_bounds = array<i64: 32, 128>}, {transform_indices = @transform_4, window_bounds = array<i64: 72, 128>}]} {
    %c0 = arith.constant 0 : index
    %c0_0 = arith.constant 0 : index
    %0 = vector.load %arg1[%c0, %c0_0] : memref<72x64xf32, #tpu.memory_space<vmem>>, vector<72x64xf32>
    %c0_1 = arith.constant 0 : index
    %c0_2 = arith.constant 0 : index
    %1 = vector.load %arg2[%c0_1, %c0_2] : memref<64x512xf32, #tpu.memory_space<vmem>>, vector<64x512xf32>
    %cst = arith.constant dense<0.000000e+00> : vector<72x512xf32>
    %2 = tpu.matmul %0, %1, %cst {dimension_numbers = #tpu.dot_dimension_numbers<[1], [0], [0], [1], [0, 0, 1, 1], [], []>} : vector<72x64xf32>, vector<64x512xf32>, vector<72x512xf32> -> vector<72x512xf32>
    %3 = vector.extract_strided_slice %2 {offsets = [0, 0], sizes = [72, 256], strides = [1, 1]} : vector<72x512xf32> to vector<72x256xf32>
    %4 = vector.extract_strided_slice %2 {offsets = [0, 256], sizes = [72, 256], strides = [1, 1]} : vector<72x512xf32> to vector<72x256xf32>
    %5 = arith.mulf %3, %3 : vector<72x256xf32>
    %6 = arith.mulf %4, %4 : vector<72x256xf32>
    %7 = arith.addf %5, %6 : vector<72x256xf32>
    %c0_3 = arith.constant 0 : index
    %c0_4 = arith.constant 0 : index
    %8 = vector.load %arg3[%c0_3, %c0_4] : memref<256x32xf32, #tpu.memory_space<vmem>>, vector<256x32xf32>
    %cst_5 = arith.constant dense<0.000000e+00> : vector<72x32xf32>
    %9 = tpu.matmul %7, %8, %cst_5 {dimension_numbers = #tpu.dot_dimension_numbers<[1], [0], [0], [1], [0, 0, 1, 1], [], []>} : vector<72x256xf32>, vector<256x32xf32>, vector<72x32xf32> -> vector<72x32xf32>
    %cst_6 = arith.constant 1.000000e-10 : f32
    %10 = vector.broadcast %cst_6 : f32 to vector<72x32xf32>
    %11 = arith.maximumf %9, %10 : vector<72x32xf32>
    %12 = math.log %11 : vector<72x32xf32>
    %c0_7 = arith.constant 0 : index
    %c0_8 = arith.constant 0 : index
    %13 = vector.load %arg4[%c0_7, %c0_8] : memref<32x128xf32, #tpu.memory_space<vmem>>, vector<32x128xf32>
    %cst_9 = arith.constant dense<0.000000e+00> : vector<72x128xf32>
    %14 = tpu.matmul %12, %13, %cst_9 {dimension_numbers = #tpu.dot_dimension_numbers<[1], [0], [0], [1], [0, 0, 1, 1], [], []>} : vector<72x32xf32>, vector<32x128xf32>, vector<72x128xf32> -> vector<72x128xf32>
    %15 = math.absf %14 : vector<72x128xf32>
    %cst_10 = arith.constant 1.000000e-10 : f32
    %16 = vector.broadcast %cst_10 : f32 to vector<72x128xf32>
    %17 = arith.addf %15, %16 : vector<72x128xf32>
    %18 = math.log %17 : vector<72x128xf32>
    %c0_11 = arith.constant 0 : index
    %c0_12 = arith.constant 0 : index
    %19 = vector.load %arg5[%c0_11, %c0_12] : memref<72x128xf32, #tpu.memory_space<vmem>>, vector<72x128xf32>
    tpu.vector_store %arg5[%c0_11, %c0_12], %18 {strides = array<i32>} : memref<72x128xf32, #tpu.memory_space<vmem>>, vector<72x128xf32>,
    return
  }
  func.func @transform_0(%arg0: i32) -> (i32, i32) {
    %c0_i32 = arith.constant 0 : i32
    %c0_i32_0 = arith.constant 0 : i32
    return %arg0, %c0_i32 : i32, i32
  }
  func.func @transform_1(%arg0: i32) -> (i32, i32) {
    %c0_i32 = arith.constant 0 : i32
    %c0_i32_0 = arith.constant 0 : i32
    %c0_i32_1 = arith.constant 0 : i32
    return %c0_i32, %c0_i32_0 : i32, i32
  }
  func.func @transform_2(%arg0: i32) -> (i32, i32) {
    %c0_i32 = arith.constant 0 : i32
    %c0_i32_0 = arith.constant 0 : i32
    %c0_i32_1 = arith.constant 0 : i32
    return %c0_i32, %c0_i32_0 : i32, i32
  }
  func.func @transform_3(%arg0: i32) -> (i32, i32) {
    %c0_i32 = arith.constant 0 : i32
    %c0_i32_0 = arith.constant 0 : i32
    %c0_i32_1 = arith.constant 0 : i32
    return %c0_i32, %c0_i32_0 : i32, i32
  }
  func.func @transform_4(%arg0: i32) -> (i32, i32) {
    %c0_i32 = arith.constant 0 : i32
    %c0_i32_0 = arith.constant 0 : i32
    return %arg0, %c0_i32 : i32, i32
  }
}

</mosaic_0001>

<bundles_post_ra>
// kernel: reverse.1
= control target key start
LH: loop header
LB: loop body
LE: loop exit
PB: predicated region body
PF: predicated region fallthrough
CT: control target
= control target key end

     0   :  { %v2_v0 = vlaneseq  ;;  %s302_s0 = inlined_call_operand.vmem [shape: f32[8,256], index: 0, kind: input, shape index: {}]   ;;  %s303_s1 = inlined_call_operand.vmem [shape: f32[8,256], index: 1, kind: output, shape index: {}]  }
   0x2   :  { %v3_v1 = vsub.s32 127, %v2_v0 }
   0x4   :  { %4 = vset.pattern.permute.xlu0 %v3_v1 }
   0x5   :  { %s265_s6 = smov 0   ;;  %s267_s7 = smov 0  }
   0x6   :  { %s269_s8 = smov 0  }
   0x7 LB: > { %s195_s9 = sadd.s32 4294967295, %s253_s8   ;;  %s19_s10 = sadd.s32 1, %s249_s7  ;;  %s253_s8 = sphi %s269_s8, %s10_s8   ;;  %s249_s7 = sphi %s267_s7, %s305_s7   ;;  %s245_s6 = sphi %s265_s6, %s304_s6  }
   0x8   : > { %p20_p0 = scmp.ge.s32.totalorder %s19_s10, 2  ;;  %p197_p1 = scmp.ge.s32.totalorder %s253_s8, 2 }
   0x9   : > { %s38_s11 = sand.u32 (!%p197_p1), 1, %s253_s8   ;;  %s41_s12 = ssub.s32 (!%p197_p1), 1, %s249_s7 }
   0xa   : > { %s307_s10 = smov (%p20_p0, %s19_s10), 0  ;;  %36 = sbr.rel (%p197_p1) target bundleno = 17 (0x11), region = 16 }
   0xb   : > { %s198_s13 = sshll.u32 (!%p197_p1), %s38_s11, 3  ;;  %s199_s14 = sshll.u32 (!%p197_p1), %s41_s12, 3 }
   0xc   : > { %s45_s17 = scalar_lea.vmem (!%p197_p1), %s302_s0, %s199_s14  ;;  %s40_s18 = scalar_lea.vmem (!%p197_p1), [#allocation0], %s198_s13 }
   0xf   : > { %v74_v2 = vld [vmem:[%s45_s17] sm:$0xff] }
  0x10   : > { %75 = vst [vmem:[%s40_s18] sm:$0xff] %v74_v2 }
  0x11 PF: > { %p200_p2 = scmp.ge.s32.totalorder %s253_s8, 1  ;;  %p80_p3 = scmp.lt.s32.totalorder %s253_s8, 3 }
  0x13   : > { %p81_p4 = pnand %p200_p2, %p80_p3 }
  0x14   : > { %s87_s19 = sand.u32 (!%p81_p4), 1, %s195_s9   ;;  %s204_s22 = sshll.u32 (!%p81_p4), %s245_s6, 3 }
  0x15   : > { %84 = sbr.rel (%p81_p4) target bundleno = 152 (0x98), region = 54  ;;  %s201_s20 = sshll.u32 (!%p81_p4), %s87_s19, 3 }
  0x16   : > { %s89_s21 = scalar_lea.vmem (!%p81_p4), [#allocation0], %s201_s20  ;;  %s110_s25 = scalar_lea.vmem (!%p81_p4), %s303_s1, %s204_s22 }
  0x1a   : > { %v99_v3 = vld [vmem:[%s89_s21] sm:$0xff] }
  0x1b   : > { %100 = vperm.xlu0 %4, %v99_v3  }
  0x96   : > { %v101_v4 = vpop.permute.xlu0 %100 }
  0x97   : > { %140 = vst [vmem:[%s110_s25] sm:$0xff] %v101_v4 }
  0x98 PF: > { %s10_s8 = sadd.s32 1, %s253_s8   ;;  %s304_s6 = smov %s249_s7 }
  0x99   : > { %p7_p5 = scmp.ge.s32.totalorder %s10_s8, 4   ;;  %s305_s7 = smov %s307_s10 }
  0x9b   :  { %9 = sbr.rel (!%p7_p5) target bundleno = 7 (0x7), region = 118 }

// kernel: lfcc_feature.1
= control target key start
LH: loop header
LB: loop body
LE: loop exit
PB: predicated region body
PF: predicated region fallthrough
CT: control target
= control target key end

     0   :  { %v910_v3 = vmov 0.0   ;;  %vm58_vm0 = vcmask 523264   ;;  %vm911_vm1 = vmmov 0   ;;  %vm551_vm2 = vcmask 261120   ;;  %s1262_s1 = inlined_call_operand.vmem [shape: f32[64,512], index: 1, kind: input, shape index: {}]   ;;  %s1263_s0 = inlined_call_operand.vmem [shape: f32[72,64], index: 0, kind: input, shape index: {}]   ;;  %s1264_s2 = inlined_call_operand.vmem [shape: f32[256,32], index: 2, kind: input, shape index: {}]   ;;  %s1265_s3 = inlined_call_operand.vmem [shape: f32[32,128], index: 3, kind: input, shape index: {}]   ;;  %s1266_s4 = inlined_call_operand.vmem [shape: f32[72,128], index: 4, kind: output, shape index: {}]  }
   0x1   :  { %v55_v0 = vld [vmem:[%s1262_s1 + $0xe8] sm:$0xff]  ;;  %v57_v1 = vld [vmem:[%s1262_s1 + $0xf8] sm:$0xff]  ;;  %v54_v2 = vld [vmem:[%s1262_s1 + $0xe0] sm:$0xff]  ;;  %150 = vmatprep.mubr.f32.mxu0 %v910_v3  ;;  %269 = vmatprep.mubr.f32.mxu1 %v910_v3 }
   0x2   :  { %102 = vmatprep.subr.mxu0 %v55_v0  ;;  %221 = vmatprep.subr.mxu1 %v57_v1  ;;  %v56_v4 = vld [vmem:[%s1262_s1 + $0xf0] sm:$0xff]  ;;  %v51_v5 = vld [vmem:[%s1262_s1 + $0xc8] sm:$0xff]  ;;  %v53_v6 = vld [vmem:[%s1262_s1 + $0xd8] sm:$0xff] }
   0x3   :  { %103 = vmatpush1.msra.mxu0 %v54_v2  ;;  %222 = vmatpush1.msra.mxu1 %v56_v4  ;;  %v50_v7 = vld [vmem:[%s1262_s1 + $0xc0] sm:$0xff]  ;;  %v52_v8 = vld [vmem:[%s1262_s1 + $0xd0] sm:$0xff]  ;;  %v47_v9 = vld [vmem:[%s1262_s1 + $0xa8] sm:$0xff] }
   0x4   :  { %104 = vmatprep.subr.mxu0 %v51_v5  ;;  %223 = vmatprep.subr.mxu1 %v53_v6  ;;  %v49_v10 = vld [vmem:[%s1262_s1 + $0xb8] sm:$0xff]  ;;  %v46_v11 = vld [vmem:[%s1262_s1 + $0xa0] sm:$0xff]  ;;  %v48_v12 = vld [vmem:[%s1262_s1 + $0xb0] sm:$0xff] }
   0x5   :  { %105 = vmatpush1.msra.mxu0 %v50_v7  ;;  %224 = vmatpush1.msra.mxu1 %v52_v8  ;;  %v43_v13 = vld [vmem:[%s1262_s1 + $0x88] sm:$0xff]  ;;  %v45_v14 = vld [vmem:[%s1262_s1 + $0x98] sm:$0xff]  ;;  %v42_v15 = vld [vmem:[%s1262_s1 + $0x80] sm:$0xff] }
   0x6   :  { %106 = vmatprep.subr.mxu0 %v47_v9  ;;  %225 = vmatprep.subr.mxu1 %v49_v10  ;;  %v44_v16 = vld [vmem:[%s1262_s1 + $0x90] sm:$0xff]  ;;  %v39_v17 = vld [vmem:[%s1262_s1 + $0x68] sm:$0xff]  ;;  %v41_v18 = vld [vmem:[%s1262_s1 + $0x78] sm:$0xff] }
   0x7   :  { %107 = vmatpush1.msra.mxu0 %v46_v11  ;;  %226 = vmatpush1.msra.mxu1 %v48_v12  ;;  %v38_v19 = vld [vmem:[%s1262_s1 + $0x60] sm:$0xff]  ;;  %v40_v20 = vld [vmem:[%s1262_s1 + $0x70] sm:$0xff]  ;;  %v35_v21 = vld [vmem:[%s1262_s1 + $0x48] sm:$0xff] }
   0x8   :  { %108 = vmatprep.subr.mxu0 %v43_v13  ;;  %227 = vmatprep.subr.mxu1 %v45_v14  ;;  %v37_v22 = vld [vmem:[%s1262_s1 + $0x58] sm:$0xff]  ;;  %v34_v23 = vld [vmem:[%s1262_s1 + $0x40] sm:$0xff]  ;;  %v36_v24 = vld [vmem:[%s1262_s1 + $0x50] sm:$0xff] }
   0x9   :  { %109 = vmatpush1.msra.mxu0 %v42_v15  ;;  %228 = vmatpush1.msra.mxu1 %v44_v16  ;;  %v31_v25 = vld [vmem:[%s1262_s1 + $0x28] sm:$0xff]  ;;  %v33_v26 = vld [vmem:[%s1262_s1 + $0x38] sm:$0xff]  ;;  %v30_v27 = vld [vmem:[%s1262_s1 + $0x20] sm:$0xff] }
   0xa   :  { %110 = vmatprep.subr.mxu0 %v39_v17  ;;  %229 = vmatprep.subr.mxu1 %v41_v18  ;;  %v32_v28 = vld [vmem:[%s1262_s1 + $0x30] sm:$0xff]  ;;  %v27_v29 = vld [vmem:[%s1262_s1 + $0x8] sm:$0xff]  ;;  %v29_v30 = vld [vmem:[%s1262_s1 + $0x18] sm:$0xff] }
   0xb   :  { %111 = vmatpush1.msra.mxu0 %v38_v19  ;;  %230 = vmatpush1.msra.mxu1 %v40_v20  ;;  %v26_v31 = vld [vmem:[%s1262_s1] sm:$0xff]  ;;  %v28_v32 = vld [vmem:[%s1262_s1 + $0x10] sm:$0xff]  ;;  %v409_v34 = vld [vmem:[%s1264_s2 + $0xf8] sm:$0xff] }
   0xc   :  { %112 = vmatprep.subr.mxu0 %v35_v21  ;;  %231 = vmatprep.subr.mxu1 %v37_v22  ;;  %v17_v33 = vld [vmem:[%s1263_s0] sm:$0xff]  ;;  %v393_v35 = vld [vmem:[%s1264_s2 + $0x78] sm:$0xff]  ;;  %v18_v36 = vld [vmem:[%s1263_s0 + $0x8] sm:$0xff] }
   0xd   :  { %113 = vmatpush1.msra.mxu0 %v34_v23  ;;  %232 = vmatpush1.msra.mxu1 %v36_v24  ;;  %v408_v37 = vld [vmem:[%s1264_s2 + $0xf0] sm:$0xff]  ;;  %v407_v40 = vld [vmem:[%s1264_s2 + $0xe8] sm:$0xff]  ;;  %v20_v42 = vld [vmem:[%s1263_s0 + $0x18] sm:$0xff] }
   0xe   :  { %114 = vmatprep.subr.mxu0 %v31_v25  ;;  %233 = vmatprep.subr.mxu1 %v33_v26  ;;  %v392_v38 = vld [vmem:[%s1264_s2 + $0x70] sm:$0xff]  ;;  %v391_v41 = vld [vmem:[%s1264_s2 + $0x68] sm:$0xff]  ;;  %v406_v43 = vld [vmem:[%s1264_s2 + $0xe0] sm:$0xff] }
   0xf   :  { %115 = vmatpush1.msra.mxu0 %v30_v27  ;;  %234 = vmatpush1.msra.mxu1 %v32_v28  ;;  %v19_v39 = vld [vmem:[%s1263_s0 + $0x10] sm:$0xff]  ;;  %v390_v44 = vld [vmem:[%s1264_s2 + $0x60] sm:$0xff]  ;;  %v405_v46 = vld [vmem:[%s1264_s2 + $0xd8] sm:$0xff] }
  0x10   :  { %116 = vmatprep.subr.mxu0 %v27_v29  ;;  %235 = vmatprep.subr.mxu1 %v29_v30  ;;  %v21_v45 = vld [vmem:[%s1263_s0 + $0x20] sm:$0xff]  ;;  %v389_v47 = vld [vmem:[%s1264_s2 + $0x58] sm:$0xff]  ;;  %v22_v48 = vld [vmem:[%s1263_s0 + $0x28] sm:$0xff] }
  0x11   :  { %117 = vmatpush1.msra.mxu0 %v26_v31  ;;  %236 = vmatpush1.msra.mxu1 %v28_v32  ;;  %v404_v49 = vld [vmem:[%s1264_s2 + $0xd0] sm:$0xff]  ;;  %v403_v52 = vld [vmem:[%s1264_s2 + $0xc8] sm:$0xff]  ;;  %v24_v54 = vld [vmem:[%s1263_s0 + $0x38] sm:$0xff] }
  0x12   :  { %738 = vmatmul.mubr.msk.f32.vlgmr.msra.gmra.mxu0 %vm58_vm0, %v17_v33  ;;  %747 = vmatmul.mubr.msk.f32.vlgmr.msra.gmra.mxu1 %vm58_vm0, %v17_v33  ;;  %v388_v50 = vld [vmem:[%s1264_s2 + $0x50] sm:$0xff]  ;;  %v387_v53 = vld [vmem:[%s1264_s2 + $0x48] sm:$0xff]  ;;  %v402_v55 = vld [vmem:[%s1264_s2 + $0xc0] sm:$0xff] }
  0x13   :  { %156 = vmatprep.mubr.f32.mxu0 %v910_v3  ;;  %275 = vmatprep.mubr.f32.mxu1 %v910_v3  ;;  %v23_v51 = vld [vmem:[%s1263_s0 + $0x30] sm:$0xff]  ;;  %v386_v56 = vld [vmem:[%s1264_s2 + $0x40] sm:$0xff]  ;;  %v401_v58 = vld [vmem:[%s1264_s2 + $0xb8] sm:$0xff] }
  0x14   :  { %765 = vmatprep.subr.mxu0 %v409_v34  ;;  %837 = vmatprep.subr.mxu1 %v910_v3  ;;  %v25_v57 = vld [vmem:[%s1263_s0 + $0x40] sm:$0xff]  ;;  %v385_v59 = vld [vmem:[%s1264_s2 + $0x38] sm:$0xff]  ;;  %v400_v60 = vld [vmem:[%s1264_s2 + $0xb0] sm:$0xff] }
  0x15   :  { %766 = vmatpush3.msra.mxu0 %v393_v35  ;;  %v384_v61 = vld [vmem:[%s1264_s2 + $0x30] sm:$0xff]  ;;  %v399_v62 = vld [vmem:[%s1264_s2 + $0xa8] sm:$0xff]  ;;  %v398_v0 = vld [vmem:[%s1264_s2 + $0xa0] sm:$0xff] }
  0x16   :  { %739 = vmatmul.mubr.msk.f32.gmra.mxu0 %vm58_vm0, %v18_v36  ;;  %748 = vmatmul.mubr.msk.f32.gmra.mxu1 %vm58_vm0, %v18_v36  ;;  %v383_v63 = vld [vmem:[%s1264_s2 + $0x28] sm:$0xff]  ;;  %v382_v1 = vld [vmem:[%s1264_s2 + $0x20] sm:$0xff]  ;;  %v397_v2 = vld [vmem:[%s1264_s2 + $0x98] sm:$0xff] }
  0x17   :  { %162 = vmatprep.mubr.f32.mxu0 %v910_v3  ;;  %281 = vmatprep.mubr.f32.mxu1 %v910_v3  ;;  %v381_v4 = vld [vmem:[%s1264_s2 + $0x18] sm:$0xff]  ;;  %v396_v5 = vld [vmem:[%s1264_s2 + $0x90] sm:$0xff]  ;;  %v395_v7 = vld [vmem:[%s1264_s2 + $0x88] sm:$0xff] }
  0x18   :  { %767 = vmatprep.subr.mxu0 %v408_v37  ;;  %v380_v6 = vld [vmem:[%s1264_s2 + $0x10] sm:$0xff]  ;;  %v379_v8 = vld [vmem:[%s1264_s2 + $0x8] sm:$0xff]  ;;  %v394_v9 = vld [vmem:[%s1264_s2 + $0x80] sm:$0xff] }
  0x19   :  { %768 = vmatpush3.msra.mxu0 %v392_v38  ;;  %v378_v10 = vld [vmem:[%s1264_s2] sm:$0xff]  ;;  %v550_v11 = vld [vmem:[%s1265_s3 + $0x18] sm:$0xff]  ;;  %v549_v12 = vld [vmem:[%s1265_s3 + $0x10] sm:$0xff] }
  0x1a   :  { %740 = vmatmul.mubr.msk.f32.gmra.mxu0 %vm58_vm0, %v19_v39  ;;  %749 = vmatmul.mubr.msk.f32.gmra.mxu1 %vm58_vm0, %v19_v39 }
  0x1b   :  { %168 = vmatprep.mubr.f32.mxu0 %v910_v3  ;;  %287 = vmatprep.mubr.f32.mxu1 %v910_v3 }
  0x1c   :  { %769 = vmatprep.subr.mxu0 %v407_v40  ;;  %838 = vmatpush3.msra.mxu1 %v550_v11 }
  0x1d   :  { %770 = vmatpush3.msra.mxu0 %v391_v41  ;;  %839 = vmatprep.subr.mxu1 %v910_v3 }
  0x1e   :  { %741 = vmatmul.mubr.msk.f32.gmra.mxu0 %vm58_vm0, %v20_v42  ;;  %750 = vmatmul.mubr.msk.f32.gmra.mxu1 %vm58_vm0, %v20_v42 }
  0x1f   :  { %174 = vmatprep.mubr.f32.mxu0 %v910_v3  ;;  %293 = vmatprep.mubr.f32.mxu1 %v910_v3 }
  0x20   :  { %771 = vmatprep.subr.mxu0 %v406_v43  ;;  %840 = vmatpush3.msra.mxu1 %v549_v12 }
  0x21   :  { %772 = vmatpush3.msra.mxu0 %v390_v44  ;;  %841 = vmatprep.subr.mxu1 %v910_v3 }
  0x22   :  { %742 = vmatmul.mubr.msk.f32.gmra.mxu0 %vm58_vm0, %v21_v45  ;;  %751 = vmatmul.mubr.msk.f32.gmra.mxu1 %vm58_vm0, %v21_v45 }
  0x23   :  { %180 = vmatprep.mubr.f32.mxu0 %v910_v3  ;;  %299 = vmatprep.mubr.f32.mxu1 %v910_v3 }
  0x24   :  { %773 = vmatprep.subr.mxu0 %v405_v46 }
  0x25   :  { %774 = vmatpush3.msra.mxu0 %v389_v47 }
  0x26   :  { %743 = vmatmul.mubr.msk.f32.gmra.mxu0 %vm58_vm0, %v22_v48  ;;  %752 = vmatmul.mubr.msk.f32.gmra.mxu1 %vm58_vm0, %v22_v48 }
  0x27   :  { %186 = vmatprep.mubr.f32.mxu0 %v910_v3  ;;  %305 = vmatprep.mubr.f32.mxu1 %v910_v3 }
  0x28   :  { %775 = vmatprep.subr.mxu0 %v404_v49 }
  0x29   :  { %776 = vmatpush3.msra.mxu0 %v388_v50 }
  0x2a   :  { %744 = vmatmul.mubr.msk.f32.gmra.mxu0 %vm58_vm0, %v23_v51  ;;  %753 = vmatmul.mubr.msk.f32.gmra.mxu1 %vm58_vm0, %v23_v51 }
  0x2b   :  { %192 = vmatprep.mubr.f32.mxu0 %v910_v3  ;;  %311 = vmatprep.mubr.f32.mxu1 %v910_v3 }
  0x2c   :  { %777 = vmatprep.subr.mxu0 %v403_v52 }
  0x2d   :  { %778 = vmatpush3.msra.mxu0 %v387_v53 }
  0x2e   :  { %745 = vmatmul.mubr.msk.f32.gmra.mxu0 %vm58_vm0, %v24_v54  ;;  %754 = vmatmul.mubr.msk.f32.gmra.mxu1 %vm58_vm0, %v24_v54 }
  0x2f   :  { %198 = vmatprep.mubr.f32.mxu0 %v910_v3  ;;  %317 = vmatprep.mubr.f32.mxu1 %v910_v3 }
  0x30   :  { %779 = vmatprep.subr.mxu0 %v402_v55 }
  0x31   :  { %780 = vmatpush3.msra.mxu0 %v386_v56 }
  0x32   :  { %746 = vmatmul.mubr.msk.f32.gmra.mxu0 %vm58_vm0, %v25_v57  ;;  %755 = vmatmul.mubr.msk.f32.gmra.mxu1 %vm58_vm0, %v25_v57 }
  0x33   :  { %781 = vmatprep.subr.mxu0 %v401_v58  ;;  %845 = vmatprep.mubr.msk.f32.mxu1 %vm911_vm1, %v910_v3 }
  0x34   :  { %782 = vmatpush3.msra.mxu0 %v385_v59 }
  0x35   :  { %783 = vmatprep.subr.mxu0 %v400_v60 }
  0x36   :  { %784 = vmatpush3.msra.mxu0 %v384_v61 }
  0x37   :  { %785 = vmatprep.subr.mxu0 %v399_v62 }
  0x38   :  { %786 = vmatpush3.msra.mxu0 %v383_v63 }
  0x39   :  { %787 = vmatprep.subr.mxu0 %v398_v0 }
  0x3a   :  { %788 = vmatpush3.msra.mxu0 %v382_v1 }
  0x3b   :  { %789 = vmatprep.subr.mxu0 %v397_v2 }
  0x3c   :  { %790 = vmatpush3.msra.mxu0 %v381_v4 }
  0x3d   :  { %791 = vmatprep.subr.mxu0 %v396_v5 }
  0x3e   :  { %792 = vmatpush3.msra.mxu0 %v380_v6 }
  0x3f   :  { %793 = vmatprep.subr.mxu0 %v395_v7 }
  0x40   :  { %794 = vmatpush3.msra.mxu0 %v379_v8 }
  0x41   :  { %795 = vmatprep.subr.mxu0 %v394_v9 }
  0x42   :  { %796 = vmatpush3.msra.mxu0 %v378_v10 }
  0xd2   :  { %v152_v13 = vpop.f32.mrf.mxu0  ;;  %v271_v14 = vpop.f32.mrf.mxu1 }
  0xd3   :  { %v324_v15 = vmul.f32 %v152_v13, %v152_v13  ;;  %v342_v16 = vmul.f32 %v271_v14, %v271_v14 }
  0xd4   :  { %v154_v17 = vpop.f32.mrf.mxu0  ;;  %v273_v18 = vpop.f32.mrf.mxu1 }
  0xd5   :  { %v325_v19 = vmul.f32 %v154_v17, %v154_v17  ;;  %v343_v20 = vmul.f32 %v273_v18, %v273_v18  ;;  %v360_v24 = vadd.f32 %v342_v16, %v324_v15 }
  0xd6   :  { %v158_v21 = vpop.f32.mrf.mxu0  ;;  %v277_v22 = vpop.f32.mrf.mxu1 }
  0xd7   :  { %v361_v23 = vadd.f32 %v343_v20, %v325_v19  ;;  %v326_v25 = vmul.f32 %v158_v21, %v158_v21  ;;  %v344_v26 = vmul.f32 %v277_v22, %v277_v22 }
  0xd8   :  { %v160_v27 = vpop.f32.mrf.mxu0  ;;  %v279_v28 = vpop.f32.mrf.mxu1 }
  0xd9   :  { %v327_v29 = vmul.f32 %v160_v27, %v160_v27  ;;  %v345_v30 = vmul.f32 %v279_v28, %v279_v28  ;;  %474 = vmatprep.mubr.f32.mxu0 %v361_v23  ;;  %v362_v34 = vadd.f32 %v344_v26, %v326_v25 }
  0xda   :  { %v164_v31 = vpop.f32.mrf.mxu0  ;;  %v283_v32 = vpop.f32.mrf.mxu1  ;;  %475 = vmatmul.mubr.f32.vlgmr.msra.gmra.mxu0 %v360_v24 }
  0xdb   :  { %v363_v33 = vadd.f32 %v345_v30, %v327_v29  ;;  %v328_v35 = vmul.f32 %v164_v31, %v164_v31  ;;  %v346_v36 = vmul.f32 %v283_v32, %v283_v32 }
  0xdc   :  { %v166_v37 = vpop.f32.mrf.mxu0  ;;  %v285_v38 = vpop.f32.mrf.mxu1 }
  0xdd   :  { %v329_v39 = vmul.f32 %v166_v37, %v166_v37  ;;  %v347_v40 = vmul.f32 %v285_v38, %v285_v38  ;;  %479 = vmatprep.mubr.f32.mxu0 %v363_v33  ;;  %v364_v44 = vadd.f32 %v346_v36, %v328_v35 }
  0xde   :  { %v170_v41 = vpop.f32.mrf.mxu0  ;;  %v289_v42 = vpop.f32.mrf.mxu1  ;;  %480 = vmatmul.mubr.f32.gmra.mxu0 %v362_v34 }
  0xdf   :  { %v365_v43 = vadd.f32 %v347_v40, %v329_v39  ;;  %v330_v45 = vmul.f32 %v170_v41, %v170_v41  ;;  %v348_v46 = vmul.f32 %v289_v42, %v289_v42  ;;  %v548_v40 = vld [vmem:[%s1265_s3 + $0x8] sm:$0xff]  ;;  %v547_v41 = vld [vmem:[%s1265_s3] sm:$0xff] }
  0xe0   :  { %v172_v47 = vpop.f32.mrf.mxu0  ;;  %v291_v48 = vpop.f32.mrf.mxu1  ;;  %842 = vmatpush3.msra.mxu1 %v548_v40 }
  0xe1   :  { %v331_v49 = vmul.f32 %v172_v47, %v172_v47  ;;  %v349_v50 = vmul.f32 %v291_v48, %v291_v48  ;;  %484 = vmatprep.mubr.f32.mxu0 %v365_v43  ;;  %v366_v54 = vadd.f32 %v348_v46, %v330_v45  ;;  %843 = vmatprep.subr.mxu1 %v910_v3 }
  0xe2   :  { %v176_v51 = vpop.f32.mrf.mxu0  ;;  %v295_v52 = vpop.f32.mrf.mxu1  ;;  %485 = vmatmul.mubr.f32.gmra.mxu0 %v364_v44  ;;  %844 = vmatpush3.msra.mxu1 %v547_v41 }
  0xe3   :  { %v367_v53 = vadd.f32 %v349_v50, %v331_v49  ;;  %v332_v55 = vmul.f32 %v176_v51, %v176_v51  ;;  %v350_v56 = vmul.f32 %v295_v52, %v295_v52 }
  0xe4   :  { %v178_v57 = vpop.f32.mrf.mxu0  ;;  %v297_v58 = vpop.f32.mrf.mxu1 }
  0xe5   :  { %v333_v59 = vmul.f32 %v178_v57, %v178_v57  ;;  %v351_v60 = vmul.f32 %v297_v58, %v297_v58  ;;  %489 = vmatprep.mubr.f32.mxu0 %v367_v53  ;;  %v368_v0 = vadd.f32 %v350_v56, %v332_v55 }
  0xe6   :  { %v182_v61 = vpop.f32.mrf.mxu0  ;;  %v301_v62 = vpop.f32.mrf.mxu1  ;;  %490 = vmatmul.mubr.f32.gmra.mxu0 %v366_v54 }
  0xe7   :  { %v369_v63 = vadd.f32 %v351_v60, %v333_v59  ;;  %v334_v1 = vmul.f32 %v182_v61, %v182_v61  ;;  %v352_v2 = vmul.f32 %v301_v62, %v301_v62 }
  0xe8   :  { %v184_v4 = vpop.f32.mrf.mxu0  ;;  %v303_v5 = vpop.f32.mrf.mxu1 }
  0xe9   :  { %v335_v6 = vmul.f32 %v184_v4, %v184_v4  ;;  %v353_v7 = vmul.f32 %v303_v5, %v303_v5  ;;  %494 = vmatprep.mubr.f32.mxu0 %v369_v63  ;;  %v370_v11 = vadd.f32 %v352_v2, %v334_v1 }
  0xea   :  { %v188_v8 = vpop.f32.mrf.mxu0  ;;  %v307_v9 = vpop.f32.mrf.mxu1  ;;  %495 = vmatmul.mubr.f32.gmra.mxu0 %v368_v0 }
  0xeb   :  { %v371_v10 = vadd.f32 %v353_v7, %v335_v6  ;;  %v336_v12 = vmul.f32 %v188_v8, %v188_v8  ;;  %v354_v13 = vmul.f32 %v307_v9, %v307_v9 }
  0xec   :  { %v190_v14 = vpop.f32.mrf.mxu0  ;;  %v309_v15 = vpop.f32.mrf.mxu1 }
  0xed   :  { %v337_v16 = vmul.f32 %v190_v14, %v190_v14  ;;  %v355_v17 = vmul.f32 %v309_v15, %v309_v15  ;;  %499 = vmatprep.mubr.f32.mxu0 %v371_v10  ;;  %v372_v21 = vadd.f32 %v354_v13, %v336_v12 }
  0xee   :  { %v194_v18 = vpop.f32.mrf.mxu0  ;;  %v313_v19 = vpop.f32.mrf.mxu1  ;;  %500 = vmatmul.mubr.f32.gmra.mxu0 %v370_v11 }
  0xef   :  { %v373_v20 = vadd.f32 %v355_v17, %v337_v16  ;;  %v338_v22 = vmul.f32 %v194_v18, %v194_v18  ;;  %v356_v23 = vmul.f32 %v313_v19, %v313_v19 }
  0xf0   :  { %v196_v24 = vpop.f32.mrf.mxu0  ;;  %v315_v25 = vpop.f32.mrf.mxu1 }
  0xf1   :  { %v339_v26 = vmul.f32 %v196_v24, %v196_v24  ;;  %v357_v27 = vmul.f32 %v315_v25, %v315_v25  ;;  %504 = vmatprep.mubr.f32.mxu0 %v373_v20  ;;  %v374_v31 = vadd.f32 %v356_v23, %v338_v22 }
  0xf2   :  { %v200_v28 = vpop.f32.mrf.mxu0  ;;  %v319_v29 = vpop.f32.mrf.mxu1  ;;  %505 = vmatmul.mubr.f32.gmra.mxu0 %v372_v21 }
  0xf3   :  { %v375_v30 = vadd.f32 %v357_v27, %v339_v26  ;;  %v340_v32 = vmul.f32 %v200_v28, %v200_v28  ;;  %v358_v33 = vmul.f32 %v319_v29, %v319_v29 }
  0xf4   :  { %v202_v34 = vpop.f32.mrf.mxu0  ;;  %v321_v35 = vpop.f32.mrf.mxu1 }
  0xf5   :  { %v341_v36 = vmul.f32 %v202_v34, %v202_v34  ;;  %v359_v37 = vmul.f32 %v321_v35, %v321_v35  ;;  %509 = vmatprep.mubr.f32.mxu0 %v375_v30  ;;  %v376_v39 = vadd.f32 %v358_v33, %v340_v32 }
  0xf6   :  { %510 = vmatmul.mubr.f32.gmra.mxu0 %v374_v31 }
  0xf7   :  { %v377_v38 = vadd.f32 %v359_v37, %v341_v36 }
  0xf9   :  { %514 = vmatprep.mubr.f32.mxu0 %v377_v38 }
  0xfa   :  { %515 = vmatmul.mubr.f32.gmra.mxu0 %v376_v39 }
 0x19a   :  { %v797_v42 = vpop.f32.mrf.mxu0 }
 0x19c   :  { %v798_v43 = vpop.f32.mrf.mxu0 }
 0x19d   :  { %v799_v44 = vadd.f32 %v798_v43, %v797_v42 }
 0x19e   :  { %v800_v45 = vpop.f32.mrf.mxu0 }
 0x19f   :  { %v520_v46 = vmax.f32 %v799_v44, 1e-10 }
 0x1a0   :  { %v801_v47 = vpop.f32.mrf.mxu0 }
 0x1a1   :  { %874 = vlog2.f32 %v520_v46  ;;  %v802_v48 = vadd.f32 %v801_v47, %v800_v45 }
 0x1a2   :  { %v803_v49 = vpop.f32.mrf.mxu0 }
 0x1a3   :  { %v521_v50 = vmax.f32 %v802_v48, 1e-10 }
 0x1a4   :  { %v804_v51 = vpop.f32.mrf.mxu0 }
 0x1a5   :  { %876 = vlog2.f32 %v521_v50  ;;  %v805_v52 = vadd.f32 %v804_v51, %v803_v49 }
 0x1a6   :  { %v806_v53 = vpop.f32.mrf.mxu0 }
 0x1a7   :  { %v522_v54 = vmax.f32 %v805_v52, 1e-10 }
 0x1a8   :  { %v807_v55 = vpop.f32.mrf.mxu0 }
 0x1a9   :  { %878 = vlog2.f32 %v522_v54  ;;  %v808_v56 = vadd.f32 %v807_v55, %v806_v53 }
 0x1aa   :  { %v809_v57 = vpop.f32.mrf.mxu0 }
 0x1ab   :  { %v523_v58 = vmax.f32 %v808_v56, 1e-10 }
 0x1ac   :  { %v810_v59 = vpop.f32.mrf.mxu0 }
 0x1ad   :  { %880 = vlog2.f32 %v523_v58  ;;  %v811_v60 = vadd.f32 %v810_v59, %v809_v57 }
 0x1ae   :  { %v875_v61 = vpop.eup %874  ;;  %v812_v62 = vpop.f32.mrf.mxu0 }
 0x1af   :  { %v530_v63 = vmul.f32 0.6931472, %v875_v61  ;;  %v524_v0 = vmax.f32 %v811_v60, 1e-10 }
 0x1b0   :  { %v813_v1 = vpop.f32.mrf.mxu0 }
 0x1b1   :  { %882 = vlog2.f32 %v524_v0  ;;  %v814_v2 = vadd.f32 %v813_v1, %v812_v62  ;;  %846 = vmatmul.mubr.msk.f32.vlgmr.msra.gmra.mxu1 %vm551_vm2, %v530_v63 }
 0x1b2   :  { %v877_v4 = vpop.eup %876  ;;  %v815_v5 = vpop.f32.mrf.mxu0  ;;  %848 = vmatprep.mubr.msk.f32.mxu1 %vm911_vm1, %v910_v3 }
 0x1b3   :  { %v532_v6 = vmul.f32 0.6931472, %v877_v4  ;;  %v525_v7 = vmax.f32 %v814_v2, 1e-10 }
 0x1b4   :  { %v816_v8 = vpop.f32.mrf.mxu0 }
 0x1b5   :  { %884 = vlog2.f32 %v525_v7  ;;  %v817_v9 = vadd.f32 %v816_v8, %v815_v5  ;;  %849 = vmatmul.mubr.msk.f32.gmra.mxu1 %vm551_vm2, %v532_v6 }
 0x1b6   :  { %v879_v10 = vpop.eup %878  ;;  %v818_v11 = vpop.f32.mrf.mxu0  ;;  %851 = vmatprep.mubr.msk.f32.mxu1 %vm911_vm1, %v910_v3 }
 0x1b7   :  { %v534_v12 = vmul.f32 0.6931472, %v879_v10  ;;  %v526_v13 = vmax.f32 %v817_v9, 1e-10 }
 0x1b8   :  { %v819_v14 = vpop.f32.mrf.mxu0 }
 0x1b9   :  { %886 = vlog2.f32 %v526_v13  ;;  %v820_v15 = vadd.f32 %v819_v14, %v818_v11  ;;  %852 = vmatmul.mubr.msk.f32.gmra.mxu1 %vm551_vm2, %v534_v12 }
 0x1ba   :  { %v881_v16 = vpop.eup %880  ;;  %v821_v17 = vpop.f32.mrf.mxu0  ;;  %854 = vmatprep.mubr.msk.f32.mxu1 %vm911_vm1, %v910_v3 }
 0x1bb   :  { %v536_v18 = vmul.f32 0.6931472, %v881_v16  ;;  %v527_v19 = vmax.f32 %v820_v15, 1e-10 }
 0x1bc   :  { %v822_v20 = vpop.f32.mrf.mxu0 }
 0x1bd   :  { %888 = vlog2.f32 %v527_v19  ;;  %v823_v21 = vadd.f32 %v822_v20, %v821_v17  ;;  %855 = vmatmul.mubr.msk.f32.gmra.mxu1 %vm551_vm2, %v536_v18 }
 0x1be   :  { %v883_v22 = vpop.eup %882  ;;  %857 = vmatprep.mubr.msk.f32.mxu1 %vm911_vm1, %v910_v3 }
 0x1bf   :  { %v538_v23 = vmul.f32 0.6931472, %v883_v22  ;;  %v528_v24 = vmax.f32 %v823_v21, 1e-10 }
 0x1c1   :  { %890 = vlog2.f32 %v528_v24  ;;  %858 = vmatmul.mubr.msk.f32.gmra.mxu1 %vm551_vm2, %v538_v23 }
 0x1c2   :  { %v885_v25 = vpop.eup %884  ;;  %860 = vmatprep.mubr.msk.f32.mxu1 %vm911_vm1, %v910_v3 }
 0x1c3   :  { %v540_v26 = vmul.f32 0.6931472, %v885_v25 }
 0x1c5   :  { %861 = vmatmul.mubr.msk.f32.gmra.mxu1 %vm551_vm2, %v540_v26 }
 0x1c6   :  { %v887_v27 = vpop.eup %886  ;;  %863 = vmatprep.mubr.msk.f32.mxu1 %vm911_vm1, %v910_v3 }
 0x1c7   :  { %v542_v28 = vmul.f32 0.6931472, %v887_v27 }
 0x1c9   :  { %864 = vmatmul.mubr.msk.f32.gmra.mxu1 %vm551_vm2, %v542_v28 }
 0x1ca   :  { %v889_v29 = vpop.eup %888  ;;  %866 = vmatprep.mubr.msk.f32.mxu1 %vm911_vm1, %v910_v3 }
 0x1cb   :  { %v544_v30 = vmul.f32 0.6931472, %v889_v29 }
 0x1cd   :  { %867 = vmatmul.mubr.msk.f32.gmra.mxu1 %vm551_vm2, %v544_v30 }
 0x1ce   :  { %v891_v31 = vpop.eup %890  ;;  %869 = vmatprep.mubr.msk.f32.mxu1 %vm911_vm1, %v910_v3 }
 0x1cf   :  { %v546_v32 = vmul.f32 0.6931472, %v891_v31 }
 0x1d1   :  { %870 = vmatmul.mubr.msk.f32.gmra.mxu1 %vm551_vm2, %v546_v32 }
 0x271   :  { %v645_v33 = vpop.f32.mrf.mxu1 }
 0x272   :  { %v689_v34 = vand.u32 2147483647, %v645_v33 }
 0x273   :  { %v847_v35 = vpop.f32.mrf.mxu1 }
 0x274   :  { %v698_v36 = vadd.f32 1e-10, %v689_v34 }
 0x275   :  { %v650_v37 = vpop.f32.mrf.mxu1 }
 0x276   :  { %892 = vlog2.f32 %v698_v36  ;;  %v690_v38 = vand.u32 2147483647, %v650_v37 }
 0x277   :  { %v850_v39 = vpop.f32.mrf.mxu1 }
 0x278   :  { %v699_v40 = vadd.f32 1e-10, %v690_v38 }
 0x279   :  { %v655_v41 = vpop.f32.mrf.mxu1 }
 0x27a   :  { %894 = vlog2.f32 %v699_v40  ;;  %v691_v42 = vand.u32 2147483647, %v655_v41 }
 0x27b   :  { %v853_v43 = vpop.f32.mrf.mxu1 }
 0x27c   :  { %v700_v44 = vadd.f32 1e-10, %v691_v42 }
 0x27d   :  { %v660_v45 = vpop.f32.mrf.mxu1 }
 0x27e   :  { %896 = vlog2.f32 %v700_v44  ;;  %v692_v3 = vand.u32 2147483647, %v660_v45 }
 0x27f   :  { %v856_v46 = vpop.f32.mrf.mxu1 }
 0x280   :  { %v701_v47 = vadd.f32 1e-10, %v692_v3 }
 0x281   :  { %v665_v48 = vpop.f32.mrf.mxu1 }
 0x282   :  { %898 = vlog2.f32 %v701_v47  ;;  %v693_v49 = vand.u32 2147483647, %v665_v48 }
 0x283   :  { %v893_v50 = vpop.eup %892  ;;  %v859_v51 = vpop.f32.mrf.mxu1 }
 0x284   :  { %v708_v52 = vmul.f32 0.6931472, %v893_v50  ;;  %v702_v53 = vadd.f32 1e-10, %v693_v49 }
 0x285   :  { %v670_v54 = vpop.f32.mrf.mxu1 }
 0x286   :  { %725 = vst [vmem:[%s1266_s4] sm:$0xff] %v708_v52  ;;  %900 = vlog2.f32 %v702_v53  ;;  %v694_v55 = vand.u32 2147483647, %v670_v54 }
 0x287   :  { %v895_v56 = vpop.eup %894  ;;  %v862_v57 = vpop.f32.mrf.mxu1 }
 0x288   :  { %v710_v58 = vmul.f32 0.6931472, %v895_v56  ;;  %v703_v59 = vadd.f32 1e-10, %v694_v55 }
 0x289   :  { %v675_v60 = vpop.f32.mrf.mxu1 }
 0x28a   :  { %726 = vst [vmem:[%s1266_s4 + $0x8] sm:$0xff] %v710_v58  ;;  %902 = vlog2.f32 %v703_v59  ;;  %v695_v61 = vand.u32 2147483647, %v675_v60 }
 0x28b   :  { %v897_v62 = vpop.eup %896  ;;  %v865_v63 = vpop.f32.mrf.mxu1 }
 0x28c   :  { %v712_v0 = vmul.f32 0.6931472, %v897_v62  ;;  %v704_v1 = vadd.f32 1e-10, %v695_v61 }
 0x28d   :  { %v680_v2 = vpop.f32.mrf.mxu1 }
 0x28e   :  { %727 = vst [vmem:[%s1266_s4 + $0x10] sm:$0xff] %v712_v0  ;;  %904 = vlog2.f32 %v704_v1  ;;  %v696_v4 = vand.u32 2147483647, %v680_v2 }
 0x28f   :  { %v899_v5 = vpop.eup %898  ;;  %v868_v6 = vpop.f32.mrf.mxu1 }
 0x290   :  { %v714_v7 = vmul.f32 0.6931472, %v899_v5  ;;  %v705_v8 = vadd.f32 1e-10, %v696_v4 }
 0x291   :  { %v685_v9 = vpop.f32.mrf.mxu1 }
 0x292   :  { %728 = vst [vmem:[%s1266_s4 + $0x18] sm:$0xff] %v714_v7  ;;  %906 = vlog2.f32 %v705_v8  ;;  %v697_v10 = vand.u32 2147483647, %v685_v9 }
 0x293   :  { %v901_v11 = vpop.eup %900  ;;  %v871_v12 = vpop.f32.mrf.mxu1 }
 0x294   :  { %v716_v13 = vmul.f32 0.6931472, %v901_v11  ;;  %v706_v14 = vadd.f32 1e-10, %v697_v10 }
 0x296   :  { %729 = vst [vmem:[%s1266_s4 + $0x20] sm:$0xff] %v716_v13  ;;  %908 = vlog2.f32 %v706_v14 }
 0x297   :  { %v903_v15 = vpop.eup %902 }
 0x298   :  { %v718_v16 = vmul.f32 0.6931472, %v903_v15 }
 0x29a   :  { %730 = vst [vmem:[%s1266_s4 + $0x28] sm:$0xff] %v718_v16 }
 0x29b   :  { %v905_v17 = vpop.eup %904 }
 0x29c   :  { %v720_v18 = vmul.f32 0.6931472, %v905_v17 }
 0x29e   :  { %731 = vst [vmem:[%s1266_s4 + $0x30] sm:$0xff] %v720_v18 }
 0x29f   :  { %v907_v19 = vpop.eup %906 }
 0x2a0   :  { %v722_v20 = vmul.f32 0.6931472, %v907_v19 }
 0x2a2   :  { %732 = vst [vmem:[%s1266_s4 + $0x38] sm:$0xff] %v722_v20 }
 0x2a3   :  { %v909_v21 = vpop.eup %908 }
 0x2a4   :  { %v724_v22 = vmul.f32 0.6931472, %v909_v21 }
 0x2a6   :  { %733 = vst [vmem:[%s1266_s4 + $0x40] sm:$0xff] %v724_v22 }

</bundles_post_ra>
